<compile_context>
chip_gen: v7x
topology: tpu7x:2x2x1
jax: 0.10.0
libtpu: 0.0.40
codegen_flags: <defaults>
</compile_context>

<pallas_src>
import jax
import jax.numpy as jnp
from jax.experimental import pallas as pl
from jax.experimental.pallas import tpu as pltpu

_LANE = 128
_SUBLANE = 8
_MiB = 1 << 20


def _pad_to(v, m):
    return ((v + m - 1) // m) * m


def _vmem_capacity_bytes():
    try:
        return int(pltpu.get_tpu_info().vmem_capacity_bytes)
    except Exception:
        return 64 * _MiB  # conservative (v7x-sized) fallback


# ---------------------------------------------------------------------------
# Kernels
# ---------------------------------------------------------------------------
def _make_pixel2d_kernel(c_in, c_out):
    """Small-channel path: pixels on (sublane, lane) => fully dense (8,128) vregs.

    x_ref: (1, C_in, rt, 128) VMEM   w_ref: (C_out, C_in) SMEM f32
    b_ref: (C_out,)           SMEM   o_ref: (1, C_out, rt, 128) VMEM
    """
    def kernel(x_ref, w_ref, b_ref, o_ref):
        # Load each input channel once (f32 for the VPU on all generations).
        xs = [x_ref[0, c].astype(jnp.float32) for c in range(c_in)]
        for o in range(c_out):
            acc = xs[0] * w_ref[o, 0]            # scalar-weight FMAs (VPU)
            for c in range(1, c_in):
                acc = acc + xs[c] * w_ref[o, c]
            acc = acc + b_ref[o]
            o_ref[0, o] = jax.nn.sigmoid(acc).astype(o_ref.dtype)
    return kernel


def _make_pixel1d_kernel(c_in, c_out, use_vpu):
    """General path: pixel axis on lanes, channels on sublanes.

    x_ref: (1, C_in, tpx)   w_ref: (C_out, C_in)   b_ref: (C_out, 1)
    o_ref: (1, C_out, tpx)
    """
    def kernel(x_ref, w_ref, b_ref, o_ref):
        b = b_ref[...].astype(jnp.float32)
        if use_vpu:
            # Tiny channel counts: unrolled broadcast FMAs on the VPU.
            x = x_ref[0].astype(jnp.float32)
            w = w_ref[...].astype(jnp.float32)
            acc = w[:, 0:1] * x[0:1, :]
            for c in range(1, c_in):
                acc = acc + w[:, c:c + 1] * x[c:c + 1, :]
        else:
            # MXU path: feed native dtype (bf16 stays bf16), accumulate in f32.
            acc = jnp.dot(w_ref[...], x_ref[0],
                          preferred_element_type=jnp.float32)
        acc = acc + b
        o_ref[0] = jax.nn.sigmoid(acc).astype(o_ref.dtype)
    return kernel


# ---------------------------------------------------------------------------
# Wrapper
# ---------------------------------------------------------------------------
def outconv_pallas(x_nchw, weight, bias):
    """sigmoid(Conv2d(kernel_size=1)(x)) for NCHW input.

    x_nchw: (N, C_in, H, W); weight: (C_out, C_in, 1, 1); bias: (C_out,).
    """
    N, C_in, H, W = x_nchw.shape
    C_out = weight.shape[0]
    HW = H * W
    itemsize = jnp.dtype(x_nchw.dtype).itemsize

    vmem_cap = _vmem_capacity_bytes()
    # Per-step HBM traffic target: bigger steps on v7x (3.2 TB/s HBM, and the
    # ~0.35 us/step grid overhead is the enemy), ~4 MiB on v5e/v6e.
    hbm_step_budget = 6 * _MiB if vmem_cap <= 96 * _MiB else 4 * _MiB
    # Double-buffered working-set cap: ~24 MiB on v7x (64 MiB VMEM), 48 MiB else.
    vmem_ws_budget = min(vmem_cap * 3 // 8, 48 * _MiB)

    small_channels = (C_in * C_out) <= 64

    if small_channels and (HW % _LANE == 0):
        # ----- pixel-2D layout: (N, C, HW//128, 128), scalar-weight FMAs -----
        rows_total = HW // _LANE
        bytes_per_row = (C_in + C_out) * _LANE * itemsize   # no channel padding
        rt_hbm = hbm_step_budget // bytes_per_row
        rt_vmem = vmem_ws_budget // (2 * bytes_per_row)
        rows_tile = max(_SUBLANE, (min(rt_hbm, rt_vmem) // _SUBLANE) * _SUBLANE)
        if N == 1 and rows_total >= 2 * _SUBLANE:
            # Guarantee >=2 (ideally 4) grid steps so both v7x TCs get work
            # and double-buffered DMA/compute overlap exists.
            target_steps = 4 if rows_total >= 4 * _SUBLANE else 2
            cap = _pad_to(-(-rows_total // target_steps), _SUBLANE)
            rows_tile = min(rows_tile, cap)
        rows_tile = min(rows_tile, rows_total)   # full dim is always legal
        grid = (N, pl.cdiv(rows_total, rows_tile))

        x_in = x_nchw.reshape(N, C_in, rows_total, _LANE)      # pure reshape
        w_sm = weight.reshape(C_out, C_in).astype(jnp.float32)  # SMEM scalars
        b_sm = bias.reshape(C_out).astype(jnp.float32)

        x_blk = C_in * _pad_to(rows_tile, _SUBLANE) * _LANE * itemsize
        o_blk = C_out * _pad_to(rows_tile, _SUBLANE) * _LANE * itemsize
        working_set = 2 * (x_blk + o_blk)       # double-buffered in/out blocks

        kernel = _make_pixel2d_kernel(C_in, C_out)
        in_specs = [
            pl.BlockSpec((1, C_in, rows_tile, _LANE), lambda n, j: (n, 0, j, 0)),
            pl.BlockSpec(memory_space=pltpu.MemorySpace.SMEM),
            pl.BlockSpec(memory_space=pltpu.MemorySpace.SMEM),
        ]
        out_specs = pl.BlockSpec((1, C_out, rows_tile, _LANE),
                                 lambda n, j: (n, 0, j, 0))
        out_shape = jax.ShapeDtypeStruct((N, C_out, rows_total, _LANE),
                                         x_nchw.dtype)
        args = (x_in, w_sm, b_sm)
    else:
        # ----- pixel-1D layout: (N, C, HW), lane-major pixels -----
        bytes_per_px = (_pad_to(C_in, _SUBLANE) + _pad_to(C_out, _SUBLANE)) * itemsize
        t_hbm = hbm_step_budget // bytes_per_px
        t_vmem = vmem_ws_budget // (2 * bytes_per_px)
        tpx = max(_LANE, (min(t_hbm, t_vmem) // _LANE) * _LANE)
        if N == 1 and HW >= 2 * _LANE:
            target_steps = 4 if HW >= 4 * _LANE else 2
            cap = _pad_to(-(-HW // target_steps), _LANE)
            tpx = min(tpx, cap)
        tpx = min(tpx, HW)                      # full dim is always legal
        grid = (N, pl.cdiv(HW, tpx))

        x_in = x_nchw.reshape(N, C_in, HW)                      # pure reshape
        w_mat = weight.reshape(C_out, C_in).astype(x_nchw.dtype)  # native feed
        b_col = bias.reshape(C_out, 1).astype(jnp.float32)

        x_blk = _pad_to(C_in, _SUBLANE) * tpx * itemsize
        o_blk = _pad_to(C_out, _SUBLANE) * tpx * itemsize
        working_set = 2 * (x_blk + o_blk)

        kernel = _make_pixel1d_kernel(C_in, C_out, use_vpu=small_channels)
        in_specs = [
            pl.BlockSpec((1, C_in, tpx), lambda n, j: (n, 0, j)),
            pl.BlockSpec((C_out, C_in), lambda n, j: (0, 0)),
            pl.BlockSpec((C_out, 1), lambda n, j: (0, 0)),
        ]
        out_specs = pl.BlockSpec((1, C_out, tpx), lambda n, j: (n, 0, j))
        out_shape = jax.ShapeDtypeStruct((N, C_out, HW), x_nchw.dtype)
        args = (x_in, w_mat, b_col)

    m_px = N * HW
    cost = pl.CostEstimate(
        flops=2 * m_px * C_in * C_out,
        transcendentals=m_px * C_out,
        bytes_accessed=itemsize * m_px * (C_in + C_out)
        + itemsize * C_in * C_out + 4 * C_out,
    )
    # Cover the double-buffered working set plus headroom; stay well under
    # physical VMEM (64 MiB on v7x, 128 MiB on v5e/v6e).
    vmem_limit = int(min(vmem_cap * 3 // 4,
                         max(32 * _MiB, 2 * working_set + 8 * _MiB)))

    out = pl.pallas_call(
        kernel,
        out_shape=out_shape,
        grid_spec=pltpu.PrefetchScalarGridSpec(
            num_scalar_prefetch=0,
            grid=grid,
            in_specs=in_specs,
            out_specs=out_specs,
        ),
        compiler_params=pltpu.CompilerParams(
            dimension_semantics=("parallel", "parallel"),
            vmem_limit_bytes=vmem_limit,
        ),
        cost_estimate=cost,
    )(*args)

    # (N, C_out, ...) back to (N, C_out, H, W): contiguous reshape only.
    return out.reshape(N, C_out, H, W)


if __name__ == "__main__":
    key = jax.random.PRNGKey(0)
    k_x, k_w, k_b, k_x2 = jax.random.split(key, 4)

    N, C_in, C_out, H, W = 2, 4, 3, 16, 16

    x = jax.random.normal(k_x, (N, C_in, H, W), dtype=jnp.float32)
    bound = 1.0 / (C_in ** 0.5)
    weight = jax.random.uniform(k_w, (C_out, C_in, 1, 1),
                                minval=-bound, maxval=bound, dtype=jnp.float32)
    bias = jax.random.uniform(k_b, (C_out,),
                              minval=-bound, maxval=bound, dtype=jnp.float32)

    def ref_fn(xv, wv, bv):
        return jax.nn.sigmoid(
            jnp.einsum("nchw,oc->nohw", xv, wv.reshape(wv.shape[0], wv.shape[1]))
            + bv.reshape(1, -1, 1, 1))

    # Main path: HW divisible by 128 -> pixel-2D scalar-FMA kernel.
    out = jax.block_until_ready(outconv_pallas(x, weight, bias))
    assert out.shape == (N, C_out, H, W)
    assert jnp.allclose(out, ref_fn(x, weight, bias), atol=1e-5, rtol=1e-5)

    # Fallback path: HW not divisible by 128 (masked lane tail, lane-major).
    H2 = W2 = 15
    x2 = jax.random.normal(k_x2, (N, C_in, H2, W2), dtype=jnp.float32)
    out2 = jax.block_until_ready(outconv_pallas(x2, weight, bias))
    assert out2.shape == (N, C_out, H2, W2)
    assert jnp.allclose(out2, ref_fn(x2, weight, bias), atol=1e-5, rtol=1e-5)

    print("KERNEL_OK")
</pallas_src>

<mosaic_0001>
module attributes {stable_mosaic.version = 11 : i64} {
  func.func @kernel(%arg0: i32, %arg1: i32, %arg2: memref<1x4x2x128xf32, #tpu.memory_space<vmem>>, %arg3: memref<3x4xf32, #tpu.memory_space<smem>>, %arg4: memref<3xf32, #tpu.memory_space<smem>>, %arg5: memref<1x3x2x128xf32, #tpu.memory_space<vmem>>) attributes {dimension_semantics = [#tpu.dimension_semantics<parallel>, #tpu.dimension_semantics<parallel>], iteration_bounds = array<i64: 2, 1>, scalar_prefetch = 0 : i64, scratch_operands = 0 : i64, tpu.core_type = #tpu.core_type<tc>, window_params = [{transform_indices = @transform_0, window_bounds = array<i64: 1, 4, 2, 128>}, {transform_indices = @transform_1, window_bounds = array<i64: 3, 4>}, {transform_indices = @transform_2, window_bounds = array<i64: 3>}, {transform_indices = @transform_3, window_bounds = array<i64: 1, 3, 2, 128>}]} {
    %c0 = arith.constant 0 : index
    %c0_0 = arith.constant 0 : index
    %c0_1 = arith.constant 0 : index
    %c0_2 = arith.constant 0 : index
    %0 = vector.load %arg2[%c0, %c0_0, %c0_1, %c0_2] : memref<1x4x2x128xf32, #tpu.memory_space<vmem>>, vector<1x1x2x128xf32>
    %1 = vector.shape_cast %0 : vector<1x1x2x128xf32> to vector<2x128xf32>
    %c0_3 = arith.constant 0 : index
    %c1 = arith.constant 1 : index
    %c0_4 = arith.constant 0 : index
    %c0_5 = arith.constant 0 : index
    %2 = vector.load %arg2[%c0_3, %c1, %c0_4, %c0_5] : memref<1x4x2x128xf32, #tpu.memory_space<vmem>>, vector<1x1x2x128xf32>
    %3 = vector.shape_cast %2 : vector<1x1x2x128xf32> to vector<2x128xf32>
    %c0_6 = arith.constant 0 : index
    %c2 = arith.constant 2 : index
    %c0_7 = arith.constant 0 : index
    %c0_8 = arith.constant 0 : index
    %4 = vector.load %arg2[%c0_6, %c2, %c0_7, %c0_8] : memref<1x4x2x128xf32, #tpu.memory_space<vmem>>, vector<1x1x2x128xf32>
    %5 = vector.shape_cast %4 : vector<1x1x2x128xf32> to vector<2x128xf32>
    %c0_9 = arith.constant 0 : index
    %c3 = arith.constant 3 : index
    %c0_10 = arith.constant 0 : index
    %c0_11 = arith.constant 0 : index
    %6 = vector.load %arg2[%c0_9, %c3, %c0_10, %c0_11] : memref<1x4x2x128xf32, #tpu.memory_space<vmem>>, vector<1x1x2x128xf32>
    %7 = vector.shape_cast %6 : vector<1x1x2x128xf32> to vector<2x128xf32>
    %c0_12 = arith.constant 0 : index
    %c0_13 = arith.constant 0 : index
    %8 = memref.load %arg3[%c0_12, %c0_13] : memref<3x4xf32, #tpu.memory_space<smem>>
    %9 = vector.broadcast %8 : f32 to vector<2x128xf32>
    %10 = arith.mulf %1, %9 : vector<2x128xf32>
    %c0_14 = arith.constant 0 : index
    %c1_15 = arith.constant 1 : index
    %11 = memref.load %arg3[%c0_14, %c1_15] : memref<3x4xf32, #tpu.memory_space<smem>>
    %12 = vector.broadcast %11 : f32 to vector<2x128xf32>
    %13 = arith.mulf %3, %12 : vector<2x128xf32>
    %14 = arith.addf %10, %13 : vector<2x128xf32>
    %c0_16 = arith.constant 0 : index
    %c2_17 = arith.constant 2 : index
    %15 = memref.load %arg3[%c0_16, %c2_17] : memref<3x4xf32, #tpu.memory_space<smem>>
    %16 = vector.broadcast %15 : f32 to vector<2x128xf32>
    %17 = arith.mulf %5, %16 : vector<2x128xf32>
    %18 = arith.addf %14, %17 : vector<2x128xf32>
    %c0_18 = arith.constant 0 : index
    %c3_19 = arith.constant 3 : index
    %19 = memref.load %arg3[%c0_18, %c3_19] : memref<3x4xf32, #tpu.memory_space<smem>>
    %20 = vector.broadcast %19 : f32 to vector<2x128xf32>
    %21 = arith.mulf %7, %20 : vector<2x128xf32>
    %22 = arith.addf %18, %21 : vector<2x128xf32>
    %c0_20 = arith.constant 0 : index
    %23 = memref.load %arg4[%c0_20] : memref<3xf32, #tpu.memory_space<smem>>
    %24 = vector.broadcast %23 : f32 to vector<2x128xf32>
    %25 = arith.addf %22, %24 : vector<2x128xf32>
    %26 = arith.negf %25 : vector<2x128xf32>
    %27 = math.exp %26 : vector<2x128xf32>
    %cst = arith.constant 1.000000e+00 : f32
    %28 = vector.broadcast %cst : f32 to vector<2x128xf32>
    %29 = arith.addf %28, %27 : vector<2x128xf32>
    %30 = arith.divf %28, %29 : vector<2x128xf32>
    %c0_21 = arith.constant 0 : index
    %c0_22 = arith.constant 0 : index
    %c0_23 = arith.constant 0 : index
    %c0_24 = arith.constant 0 : index
    %31 = vector.load %arg5[%c0_21, %c0_22, %c0_23, %c0_24] : memref<1x3x2x128xf32, #tpu.memory_space<vmem>>, vector<1x1x2x128xf32>
    %32 = vector.shape_cast %31 : vector<1x1x2x128xf32> to vector<2x128xf32>
    %33 = vector.shape_cast %30 : vector<2x128xf32> to vector<1x1x2x128xf32>
    tpu.vector_store %arg5[%c0_21, %c0_22, %c0_23, %c0_24], %33 {strides = array<i32>} : memref<1x3x2x128xf32, #tpu.memory_space<vmem>>, vector<1x1x2x128xf32>,
    %c1_25 = arith.constant 1 : index
    %c0_26 = arith.constant 0 : index
    %34 = memref.load %arg3[%c1_25, %c0_26] : memref<3x4xf32, #tpu.memory_space<smem>>
    %35 = vector.broadcast %34 : f32 to vector<2x128xf32>
    %36 = arith.mulf %1, %35 : vector<2x128xf32>
    %c1_27 = arith.constant 1 : index
    %c1_28 = arith.constant 1 : index
    %37 = memref.load %arg3[%c1_27, %c1_28] : memref<3x4xf32, #tpu.memory_space<smem>>
    %38 = vector.broadcast %37 : f32 to vector<2x128xf32>
    %39 = arith.mulf %3, %38 : vector<2x128xf32>
    %40 = arith.addf %36, %39 : vector<2x128xf32>
    %c1_29 = arith.constant 1 : index
    %c2_30 = arith.constant 2 : index
    %41 = memref.load %arg3[%c1_29, %c2_30] : memref<3x4xf32, #tpu.memory_space<smem>>
    %42 = vector.broadcast %41 : f32 to vector<2x128xf32>
    %43 = arith.mulf %5, %42 : vector<2x128xf32>
    %44 = arith.addf %40, %43 : vector<2x128xf32>
    %c1_31 = arith.constant 1 : index
    %c3_32 = arith.constant 3 : index
    %45 = memref.load %arg3[%c1_31, %c3_32] : memref<3x4xf32, #tpu.memory_space<smem>>
    %46 = vector.broadcast %45 : f32 to vector<2x128xf32>
    %47 = arith.mulf %7, %46 : vector<2x128xf32>
    %48 = arith.addf %44, %47 : vector<2x128xf32>
    %c1_33 = arith.constant 1 : index
    %49 = memref.load %arg4[%c1_33] : memref<3xf32, #tpu.memory_space<smem>>
    %50 = vector.broadcast %49 : f32 to vector<2x128xf32>
    %51 = arith.addf %48, %50 : vector<2x128xf32>
    %52 = arith.negf %51 : vector<2x128xf32>
    %53 = math.exp %52 : vector<2x128xf32>
    %cst_34 = arith.constant 1.000000e+00 : f32
    %54 = vector.broadcast %cst_34 : f32 to vector<2x128xf32>
    %55 = arith.addf %54, %53 : vector<2x128xf32>
    %56 = arith.divf %54, %55 : vector<2x128xf32>
    %c0_35 = arith.constant 0 : index
    %c1_36 = arith.constant 1 : index
    %c0_37 = arith.constant 0 : index
    %c0_38 = arith.constant 0 : index
    %57 = vector.load %arg5[%c0_35, %c1_36, %c0_37, %c0_38] : memref<1x3x2x128xf32, #tpu.memory_space<vmem>>, vector<1x1x2x128xf32>
    %58 = vector.shape_cast %57 : vector<1x1x2x128xf32> to vector<2x128xf32>
    %59 = vector.shape_cast %56 : vector<2x128xf32> to vector<1x1x2x128xf32>
    tpu.vector_store %arg5[%c0_35, %c1_36, %c0_37, %c0_38], %59 {strides = array<i32>} : memref<1x3x2x128xf32, #tpu.memory_space<vmem>>, vector<1x1x2x128xf32>,
    %c2_39 = arith.constant 2 : index
    %c0_40 = arith.constant 0 : index
    %60 = memref.load %arg3[%c2_39, %c0_40] : memref<3x4xf32, #tpu.memory_space<smem>>
    %61 = vector.broadcast %60 : f32 to vector<2x128xf32>
    %62 = arith.mulf %1, %61 : vector<2x128xf32>
    %c2_41 = arith.constant 2 : index
    %c1_42 = arith.constant 1 : index
    %63 = memref.load %arg3[%c2_41, %c1_42] : memref<3x4xf32, #tpu.memory_space<smem>>
    %64 = vector.broadcast %63 : f32 to vector<2x128xf32>
    %65 = arith.mulf %3, %64 : vector<2x128xf32>
    %66 = arith.addf %62, %65 : vector<2x128xf32>
    %c2_43 = arith.constant 2 : index
    %c2_44 = arith.constant 2 : index
    %67 = memref.load %arg3[%c2_43, %c2_44] : memref<3x4xf32, #tpu.memory_space<smem>>
    %68 = vector.broadcast %67 : f32 to vector<2x128xf32>
    %69 = arith.mulf %5, %68 : vector<2x128xf32>
    %70 = arith.addf %66, %69 : vector<2x128xf32>
    %c2_45 = arith.constant 2 : index
    %c3_46 = arith.constant 3 : index
    %71 = memref.load %arg3[%c2_45, %c3_46] : memref<3x4xf32, #tpu.memory_space<smem>>
    %72 = vector.broadcast %71 : f32 to vector<2x128xf32>
    %73 = arith.mulf %7, %72 : vector<2x128xf32>
    %74 = arith.addf %70, %73 : vector<2x128xf32>
    %c2_47 = arith.constant 2 : index
    %75 = memref.load %arg4[%c2_47] : memref<3xf32, #tpu.memory_space<smem>>
    %76 = vector.broadcast %75 : f32 to vector<2x128xf32>
    %77 = arith.addf %74, %76 : vector<2x128xf32>
    %78 = arith.negf %77 : vector<2x128xf32>
    %79 = math.exp %78 : vector<2x128xf32>
    %cst_48 = arith.constant 1.000000e+00 : f32
    %80 = vector.broadcast %cst_48 : f32 to vector<2x128xf32>
    %81 = arith.addf %80, %79 : vector<2x128xf32>
    %82 = arith.divf %80, %81 : vector<2x128xf32>
    %c0_49 = arith.constant 0 : index
    %c2_50 = arith.constant 2 : index
    %c0_51 = arith.constant 0 : index
    %c0_52 = arith.constant 0 : index
    %83 = vector.load %arg5[%c0_49, %c2_50, %c0_51, %c0_52] : memref<1x3x2x128xf32, #tpu.memory_space<vmem>>, vector<1x1x2x128xf32>
    %84 = vector.shape_cast %83 : vector<1x1x2x128xf32> to vector<2x128xf32>
    %85 = vector.shape_cast %82 : vector<2x128xf32> to vector<1x1x2x128xf32>
    tpu.vector_store %arg5[%c0_49, %c2_50, %c0_51, %c0_52], %85 {strides = array<i32>} : memref<1x3x2x128xf32, #tpu.memory_space<vmem>>, vector<1x1x2x128xf32>,
    return
  }
  func.func @transform_0(%arg0: i32, %arg1: i32) -> (i32, i32, i32, i32) {
    %c0_i32 = arith.constant 0 : i32
    %c0_i32_0 = arith.constant 0 : i32
    %c0_i32_1 = arith.constant 0 : i32
    return %arg0, %c0_i32, %arg1, %c0_i32_0 : i32, i32, i32, i32
  }
  func.func @transform_1(%arg0: i32, %arg1: i32) -> (i32, i32) {
    %c0_i32 = arith.constant 0 : i32
    %c0_i32_0 = arith.constant 0 : i32
    %c0_i32_1 = arith.constant 0 : i32
    return %c0_i32, %c0_i32_0 : i32, i32
  }
  func.func @transform_2(%arg0: i32, %arg1: i32) -> i32 {
    %c0_i32 = arith.constant 0 : i32
    %c0_i32_0 = arith.constant 0 : i32
    return %c0_i32 : i32
  }
  func.func @transform_3(%arg0: i32, %arg1: i32) -> (i32, i32, i32, i32) {
    %c0_i32 = arith.constant 0 : i32
    %c0_i32_0 = arith.constant 0 : i32
    %c0_i32_1 = arith.constant 0 : i32
    return %arg0, %c0_i32, %arg1, %c0_i32_0 : i32, i32, i32, i32
  }
}

</mosaic_0001>

<bundles_post_ra>
// kernel: tpu_custom_call.1
= control target key start
LH: loop header
LB: loop body
LE: loop exit
PB: predicated region body
PF: predicated region fallthrough
CT: control target
= control target key end

     0   :  { %8 = vsyncpa [#allocation3], 0  ;;  %s985_s0 = inlined_call_operand.hbm [shape: f32[2,4,2,128], index: 0, kind: input, shape index: {}]   ;;  %s986_s1 = inlined_call_operand.hbm [shape: f32[3,4], index: 1, kind: input, shape index: {}]   ;;  %s987_s2 = inlined_call_operand.vmem [shape: f32[3], index: 2, kind: input, shape index: {}]   ;;  %s988_s3 = inlined_call_operand.hbm [shape: f32[2,3,2,128], index: 3, kind: output, shape index: {}]  }
   0x1   :  { %10 = vsyncpa [#allocation3 + $0x1], 0 }
   0x2   :  { %11 = vsyncpa [#allocation5], 0 }
   0x3   :  { %12 = vsyncpa [#allocation6], 0 }
   0x4   :  { %13 = vsyncpa [#allocation4], 0 }
   0x5   :  { %15 = vsyncpa [#allocation4 + $0x1], 0  ;;  %s756_s12 = smov 0   ;;  %s758_s13 = smov 0  }
   0x6   :  { %s760_s14 = smov 0   ;;  %s762_s15 = smov 0  }
   0x7   :  { %s764_s16 = smov 0   ;;  %s766_s17 = smov 0  }
   0x8 LB: > { %s439_s18 = sadd.s32 4294967295, %s726_s17   ;;  %s440_s19 = sadd.s32 4294967294, %s726_s17   ;;  %s726_s17 = sphi %s766_s17, %s21_s17   ;;  %s722_s16 = sphi %s764_s16, %s1009_s16   ;;  %s718_s15 = sphi %s762_s15, %s1008_s15   ;;  %s714_s14 = sphi %s760_s14, %s1007_s14   ;;  %s710_s13 = sphi %s758_s13, %s1006_s13   ;;  %s706_s12 = sphi %s756_s12, %s1005_s12  }
   0x9   : > { %s42_s20 = sadd.s32 1, %s714_s14  ;;  %p49_p0 = scmp.ne.s32.totalorder %s714_s14, %s710_s13 }
   0xa   : > { %p50_p1 = scmp.eq.s32.totalorder %s726_s17, 0  ;;  %p55_p2 = scmp.ne.s32.totalorder %s710_s13, %s706_s12 }
   0xb   : > { %p794_p3 = scmp.eq.s32.totalorder %s439_s18, 0  ;;  %p123_p4 = scmp.eq.s32.totalorder %s439_s18, 1 }
   0xc   : > { %p51_p5 = por %p50_p1, %p49_p0  ;;  %p129_p6 = scmp.eq.s32.totalorder %s440_s19, 1 }
   0xd   : > { %s993_s21 = scalar_select %p794_p3, 1, 0 }
   0xe   : > { %p800_p7 = por %p794_p3, %p55_p2  ;;  %p804_p8 = por %p123_p4, %p49_p0 }
   0xf   : > { %p808_p9 = por %p129_p6, %p55_p2  ;;  %p441_p10 = scmp.ge.s32.totalorder %s726_s17, 1 }
  0x10   : > { %s994_s22 = scalar_select %p800_p7, 1, 0 }
  0x11   : > { %s995_s23 = scalar_select %p804_p8, 1, 0 }
  0x12   : > { %s996_s24 = scalar_select %p808_p9, 1, 0 }
  0x13   : > { %p136_p11 = scmp.lt.s32.totalorder %s726_s17, 3  ;;  %p508_p1 = scmp.lt.s32.totalorder %s726_s17, 2 }
  0x14   : > { %s158_s28 = sshll.u32 %s987_s2, 4  ;;  %s169_s4 = sand.u32 1, %s714_s14   ;;  %s159_s28 = int_to_ptr.vmem [resolvable:$true] %s158_s28 }
  0x15   : > { %p815_p13 = pnand %p441_p10, %p136_p11  ;;  %p825_p4 = pnand %p508_p1, %p51_p5 }
  0x16   : > { %s33_s5 = sadd.s32 1, %s722_s16  ;;  %s578_s8 = scalar_lea.hbm %s986_s1, 64 }
  0x17   : > { %p491_p0 = pneg %p815_p13  ;;  %p579_p5 = scmp.ne.s32.totalorder %s986_s1, %s578_s8 }
  0x18   : > { %p585_p1 = scmp.lt.u32.totalorder %s578_s8, %s986_s1 }
  0x19   : > { %p831_p2 = pnand %p491_p0, %p794_p3 }
  0x1b   : > { %p580_p6 = pneg %p831_p2 }
  0x1d   : > { %p581_p10 = pnand %p580_p6, %p579_p5 }
  0x1f   : > { %p582_p11 = pneg %p581_p10 }
  0x21   : > { %p587_p0 = pnand %p585_p1, %p582_p11 }
  0x23   : > { %590 = shalt.err (!%p587_p0)
}
  0x24   : > { %s728_s19 = smov [#allocation7]   ;;  %s591_s6 = scalar_lea.vmem %s159_s28, 16 }
  0x25   : > { %494 = dma.hbm_to_smem (!%p831_p2), %s986_s1, 64, %s728_s19, [#allocation5]  }
  0x26   : > { %p592_p12 = scmp.ne.s32.totalorder %s159_s28, %s591_s6  ;;  %p599_p3 = scmp.lt.s32.totalorder %s159_s28, %s159_s28 }
  0x27   : > { %p600_p5 = scmp.lt.s32.totalorder %s591_s6, %s591_s6 }
  0x28   : > { %p594_p9 = pnand %p592_p12, %p580_p6 }
  0x29   : > { %p601_p10 = por %p600_p5, %p599_p3 }
  0x2a   : > { %p595_p8 = pneg %p594_p9 }
  0x2c   : > { %p602_p7 = pnand %p601_p10, %p595_p8 }
  0x2e   : > { %605 = shalt.err (!%p602_p7)
}
  0x2f   : > { %s729_s7 = smov [#allocation8]   ;;  %p35_p11 = scmp.ge.s32.totalorder %s33_s5, 2 }
  0x30   : > { %497 = dma.vmem_to_smem (!%p831_p2), %s159_s28, 16, %s729_s7, [#allocation6]  }
  0x31   : > { %s445_s8 = sshll.u32 %s169_s4, 3  ;;  %s476_s9 = sshll.u32 %s722_s16, 7 }
  0x32   : > { %s1011_s5 = smov (%p35_p11, %s33_s5), 0  ;;  %s863_s30 = scalar_lea.hbm %s985_s0, %s476_s9 }
  0x33   : > { %s37_s18 = ssub.s32 %s722_s16, %s1011_s5  ;;  %s173_s19 = scalar_lea.vmem [#allocation2], %s445_s8 }
  0x34   : > { %s181_s28 = sshll.u32 %s173_s19, 4  ;;  %p40_p3 = scmp.eq.s32.totalorder %s37_s18, 0  ;;  %s867_s28 = int_to_ptr.vmem [resolvable:$true] %s181_s28 }
  0x35   : > { %s876_s27 = scalar_lea.sflag [#allocation3], %s169_s4  ;;  %s606_s6 = scalar_lea.hbm %s863_s30, 128 }
  0x36   : > { %s872_s26 = scalar_select %p40_p3, %s714_s14, %s42_s20  }
  0x37   : > { %p607_p7 = scmp.ne.s32.totalorder %s863_s30, %s606_s6  ;;  %p608_p8 = pneg %p825_p4 }
  0x38   : > { %s611_s9 = scalar_lea.hbm %s985_s0, 256  ;;  %p612_p2 = scmp.lt.u32.totalorder %s863_s30, %s985_s0 }
  0x39   : > { %p609_p9 = pnand %p608_p8, %p607_p7  ;;  %p613_p6 = scmp.lt.u32.totalorder %s611_s9, %s606_s6 }
  0x3a   : > { %p615_p0 = scmp.lt.u32.totalorder %s606_s6, %s863_s30 }
  0x3b   : > { %p610_p12 = pneg %p609_p9  ;;  %p614_p1 = por %p613_p6, %p612_p2 }
  0x3d   : > { %p616_p5 = por %p615_p0, %p614_p1 }
  0x3f   : > { %p617_p10 = pnand %p616_p5, %p610_p12 }
  0x41   : > { %620 = shalt.err (!%p617_p10)
}
  0x42   : > { %s621_s20 = scalar_lea.vmem %s867_s28, 128  ;;  %s730_s4 = smov [#allocation2]  }
  0x43   : > { %p622_p11 = scmp.ne.s32.totalorder %s867_s28, %s621_s20  ;;  %s626_s18 = sshll.u32 %s730_s4, 4  ;;  %s627_s18 = int_to_ptr.vmem [resolvable:$false] %s626_s18 }
  0x44   : > { %s628_s19 = scalar_lea.vmem %s627_s18, 256  ;;  %p629_p9 = scmp.lt.s32.totalorder %s867_s28, %s627_s18 }
  0x45   : > { %p624_p3 = pnand %p622_p11, %p608_p8  ;;  %p630_p2 = scmp.lt.s32.totalorder %s628_s19, %s621_s20 }
  0x47   : > { %p625_p7 = pneg %p624_p3  ;;  %p631_p6 = por %p630_p2, %p629_p9 }
  0x49   : > { %p632_p1 = pnand %p631_p6, %p625_p7 }
  0x4b   : > { %635 = shalt.err (!%p632_p1)
}
  0x4c   : > { %s731_s6 = smov 32   ;;  %s732_s7 = smov 2  }
  0x4d   : > { %501 = dma.hbm_to_vmem [thread:$0]  (!%p825_p4), %s863_s30, 128, %s867_s28, %s876_s27, %s731_s6, %s731_s6, %s732_s7  }
  0x4e   : > { %193 = sbr.rel (%p815_p13) target bundleno = 156 (0x9c), region = 32  ;;  %s907_s8 = sand.u32 (!%p815_p13), 1, %s710_s13  }
  0x4f   : > { %s449_s9 = sshll.u32 (!%p815_p13), %s907_s8, 3  ;;  %s196_s10 = scalar_lea.sflag (!%p815_p13), [#allocation3], %s907_s8 }
  0x50   : > { %s199_s11 = scalar_lea.vmem (!%p815_p13), [#allocation2], %s449_s9  ;;  %p1000_p8 = scmp.ne.s32.totalorder (!%p815_p13), %s994_s22, 0 }
  0x55   : > { %689 = dma.done.wait (%p1000_p8), %s196_s10, 128  }
  0x56   : > { %691 = vsyncadd (%p1000_p8), %s196_s10, 4294967168  ;;  %p1001_p12 = scmp.ne.s32.totalorder %s993_s21, 0 }
  0x58   : > { %693 = dma.done.wait (%p1001_p12), [#allocation5], 64  }
  0x59   : > { %695 = vsyncadd (%p1001_p12), [#allocation5], 4294967232 }
  0x5a   : > { %697 = dma.done.wait (%p1001_p12), [#allocation6], 16  }
  0x5b   : > { %699 = vsyncadd (%p1001_p12), [#allocation6], 4294967280 }
  0x5c   : > { %212 = sfence }
  0x5d   : > { %s238_s25 = sld [smem:[#allocation7]]  ;;  %s455_s29 = sld [smem:[#allocation7 + $0x1]]  ;;  %v231_v0 = vld [vmem:[%s199_s11] sm:$0x3]  ;;  %v452_v1 = vld [vmem:[%s199_s11 + $0x2] sm:$0x3] }
  0x5e   : > { %s456_s30 = sld [smem:[#allocation7 + $0x2]]  ;;  %s457_s28 = sld [smem:[#allocation7 + $0x3]]  ;;  %v453_v2 = vld [vmem:[%s199_s11 + $0x4] sm:$0x3]  ;;  %v454_v4 = vld [vmem:[%s199_s11 + $0x6] sm:$0x3] }
  0x5f   : > { %s923_s22 = sld [smem:[#allocation8]]  ;;  %s460_s20 = sld [smem:[#allocation7 + $0x81]] }
  0x60   : > { %s459_s27 = sld [smem:[#allocation7 + $0x80]]  ;;  %s461_s4 = sld [smem:[#allocation7 + $0x82]] }
  0x61   : > { %s462_s18 = sld [smem:[#allocation7 + $0x83]]  ;;  %s466_s21 = sld [smem:[#allocation7 + $0x100]] }
  0x62   : > { %s467_s19 = sld [smem:[#allocation7 + $0x101]]  ;;  %s468_s6 = sld [smem:[#allocation7 + $0x102]] }
  0x63   : > { %v239_v3 = vstv %s238_s25  ;;  %v242_v6 = vstv %s455_s29  ;;  %s469_s7 = sld [smem:[#allocation7 + $0x103]]  ;;  %s925_s9 = sld [smem:[#allocation8 + $0x1]] }
  0x64   : > { %v240_v5 = vmul.f32 %v239_v3, %v231_v0  ;;  %v243_v7 = vmul.f32 %v452_v1, %v242_v6  ;;  %v246_v8 = vstv %s456_s30  ;;  %v250_v9 = vstv %s457_s28  ;;  %s470_s10 = sld [smem:[#allocation8 + $0x2]]  ;;  %s477_s11 = smul.u32 6, %s907_s8 }
  0x65   : > { %v247_v10 = vmul.f32 %v453_v2, %v246_v8  ;;  %v251_v12 = vmul.f32 %v454_v4, %v250_v9  ;;  %v267_v15 = vstv %s460_s20  ;;  %v254_v21 = vstv %s923_s22  ;;  %s478_s30 = smul.u32 96, %s718_s15  ;;  %s316_s20 = scalar_lea.sflag [#allocation4], %s907_s8 }
  0x66   : > { %v244_v11 = vadd.f32 %v243_v7, %v240_v5  ;;  %v264_v13 = vstv %s459_s27  ;;  %v271_v16 = vstv %s461_s4  ;;  %v268_v18 = vmul.f32 %v452_v1, %v267_v15  ;;  %s230_s25 = scalar_lea.vmem [#allocation9], %s477_s11  ;;  %p1002_p4 = scmp.ne.s32.totalorder %s995_s23, 0 }
  0x67   : > { %v265_v14 = vmul.f32 %v264_v13, %v231_v0  ;;  %v272_v19 = vmul.f32 %v453_v2, %v271_v16  ;;  %v275_v20 = vstv %s462_s18  ;;  %v290_v23 = vstv %s466_s21  ;;  %s330_s29 = sshll.u32 %s230_s25, 4  ;;  %s936_s27 = scalar_lea.hbm %s988_s3, %s478_s30  ;;  %s931_s29 = int_to_ptr.vmem [resolvable:$true] %s330_s29 }
  0x68   : > { %v248_v17 = vadd.f32 %v247_v10, %v244_v11  ;;  %v276_v22 = vmul.f32 %v454_v4, %v275_v20  ;;  %v293_v24 = vstv %s467_s19  ;;  %v291_v27 = vmul.f32 %v290_v23, %v231_v0  ;;  %s636_s4 = scalar_lea.vmem %s931_s29, 96  ;;  %s733_s15 = smov [#allocation9]  }
  0x69   : > { %v269_v26 = vadd.f32 %v268_v18, %v265_v14  ;;  %v294_v28 = vmul.f32 %v452_v1, %v293_v24  ;;  %v297_v29 = vstv %s468_s6  ;;  %v301_v30 = vstv %s469_s7  ;;  %p637_p13 = scmp.ne.s32.totalorder %s931_s29, %s636_s4  ;;  %s640_s18 = sshll.u32 %s733_s15, 4  ;;  %s641_s18 = int_to_ptr.vmem [resolvable:$false] %s640_s18 }
  0x6a   : > { %v252_v25 = vadd.f32 %v251_v12, %v248_v17  ;;  %v298_v34 = vmul.f32 %v453_v2, %v297_v29  ;;  %v279_v35 = vstv %s925_s9  ;;  %v302_v36 = vmul.f32 %v454_v4, %v301_v30  ;;  %s642_s21 = scalar_lea.vmem %s641_s18, 192  ;;  %p643_p10 = scmp.lt.s32.totalorder %s931_s29, %s641_s18 }
  0x6b   : > { %v273_v32 = vadd.f32 %v272_v19, %v269_v26  ;;  %v295_v33 = vadd.f32 %v294_v28, %v291_v27  ;;  %v305_v40 = vstv %s470_s10  ;;  %p638_p0 = pnand %p637_p13, %p1002_p4  ;;  %p644_p11 = scmp.lt.s32.totalorder %s642_s21, %s636_s4 }
  0x6c   : > { %v255_v31 = vadd.f32 %v254_v21, %v252_v25 }
  0x6d   : > { %v277_v38 = vadd.f32 %v276_v22, %v273_v32  ;;  %v299_v39 = vadd.f32 %v298_v34, %v295_v33  ;;  %p639_p5 = pneg %p638_p0  ;;  %p645_p3 = por %p644_p11, %p643_p10 }
  0x6e   : > { %v458_v37 = vmul.f32 -1.442695, %v255_v31 }
  0x6f   : > { %v280_v41 = vadd.f32 %v279_v35, %v277_v38  ;;  %v303_v42 = vadd.f32 %v302_v36, %v299_v39  ;;  %p646_p7 = pnand %p645_p3, %p639_p5 }
  0x70   : > { %566 = vpow2.f32 %v458_v37 }
  0x71   : > { %v464_v43 = vmul.f32 -1.442695, %v280_v41  ;;  %v306_v44 = vadd.f32 %v305_v40, %v303_v42 }
  0x73   : > { %568 = vpow2.f32 %v464_v43  ;;  %v471_v45 = vmul.f32 -1.442695, %v306_v44 }
  0x75   : > { %570 = vpow2.f32 %v471_v45 }
  0x7a   : > { %v567_v46 = vpop.eup %566 }
  0x7b   : > { %v259_v47 = vadd.f32 1.0, %v567_v46 }
  0x7d   : > { %572 = vrcp.f32 %v259_v47  ;;  %v569_v48 = vpop.eup %568 }
  0x7e   : > { %v284_v49 = vadd.f32 1.0, %v569_v48 }
  0x7f   : > { %v571_v50 = vpop.eup %570 }
  0x80   : > { %574 = vrcp.f32 %v284_v49  ;;  %v310_v51 = vadd.f32 1.0, %v571_v50 }
  0x82   : > { %576 = vrcp.f32 %v310_v51 }
  0x87   : > { %v573_v52 = vpop.eup %572 }
  0x88   : > { %262 = vst [vmem:[%s230_s25] sm:$0x3] %v573_v52 }
  0x8a   : > { %v575_v53 = vpop.eup %574 }
  0x8b   : > { %465 = vst [vmem:[%s230_s25 + $0x2] sm:$0x3] %v575_v53 }
  0x8c   : > { %v577_v54 = vpop.eup %576 }
  0x8d   : > { %472 = vst [vmem:[%s230_s25 + $0x4] sm:$0x3] %v577_v54 }
  0x8e   : > { %649 = shalt.err (!%p646_p7)
}
  0x8f   : > { %s650_s19 = scalar_lea.hbm %s936_s27, 96  ;;  %s654_s9 = scalar_lea.hbm %s988_s3, 192 }
  0x90   : > { %p651_p9 = scmp.ne.s32.totalorder %s936_s27, %s650_s19  ;;  %p655_p1 = scmp.lt.u32.totalorder %s936_s27, %s988_s3 }
  0x91   : > { %p656_p8 = scmp.lt.u32.totalorder %s654_s9, %s650_s19  ;;  %p658_p13 = scmp.lt.u32.totalorder %s650_s19, %s936_s27 }
  0x92   : > { %p652_p2 = pnand %p651_p9, %p1002_p4 }
  0x93   : > { %p657_p12 = por %p656_p8, %p655_p1 }
  0x94   : > { %p653_p6 = pneg %p652_p2 }
  0x95   : > { %p659_p0 = por %p658_p13, %p657_p12 }
  0x97   : > { %p660_p5 = pnand %p659_p0, %p653_p6 }
  0x99   : > { %663 = shalt.err (!%p660_p5)
}
  0x9a   : > { %s734_s25 = smov 32   ;;  %s735_s30 = smov 2  }
  0x9b   : > { %489 = dma.vmem_to_hbm [thread:$0]  (%p1002_p4), %s931_s29, 96, %s936_s27, %s316_s20, %s734_s25, %s734_s25, %s735_s30  }
  0x9c PF: > { %s345_s28 = sand.u32 1, %s706_s12   ;;  %p1003_p10 = scmp.ne.s32.totalorder %s996_s24, 0 }
  0x9d   : > { %p1004_p11 = scmp.ge.s32.totalorder %s726_s17, 2  ;;  %s346_s22 = scalar_lea.sflag [#allocation4], %s345_s28 }
  0x9f   : > { %p503_p3 = pnand %p1004_p11, %p1003_p10 }
  0xa1   : > { %701 = dma.done.wait (!%p503_p3), %s346_s22, 96  }
  0xa2   : > { %703 = vsyncadd (!%p503_p3), %s346_s22, 4294967200  ;;  %s21_s17 = sadd.s32 1, %s726_s17   ;;  %s1005_s12 = smov %s710_s13 }
  0xa3   : > { %p18_p7 = scmp.ge.s32.totalorder %s21_s17, 4   ;;  %s1006_s13 = smov %s714_s14 }
  0xa4   : > { %s1007_s14 = smov %s872_s26  ;;  %s1008_s15 = smov %s722_s16 }
  0xa5   : > { %s1009_s16 = smov %s1011_s5  ;;  %20 = sbr.rel (!%p18_p7) target bundleno = 8 (0x8), region = 92 }
  0xac   :  { %351 = vsyncpa [#allocation3], 1 }
  0xad   :  { %353 = vsyncpa [#allocation3 + $0x1], 1 }
  0xae   :  { %354 = vsyncpa [#allocation4], 1 }
  0xaf   :  { %356 = vsyncpa [#allocation4 + $0x1], 1 }
  0xb0   :  { %357 = vsyncpa [#allocation5], 1 }
  0xb1   :  { %359 = vsyncpa [#allocation5 + $0x1], 1 }
  0xb2   :  { %360 = vsyncpa [#allocation6], 1 }
  0xb3   :  { %362 = vsyncpa [#allocation6 + $0x1], 1 }

</bundles_post_ra>
